<compile_context>
chip_gen: v5e
topology: v5e:2x2
jax: 0.10.0
libtpu: 0.0.40
codegen_flags: <defaults>
</compile_context>

<pallas_src>
import numpy as np
import jax
import jax.numpy as jnp
from jax.experimental import pallas as pl
from jax.experimental.pallas import tpu as pltpu


def _round_up(x, m):
    return (x + m - 1) // m * m


def _round_down_clamped(x, m):
    return max(m, (x // m) * m)


def _make_relative_position_index(window_size):
    """Replicates the PyTorch buffer construction (host-side numpy glue)."""
    Wh, Ww = window_size
    num_relative_distance = (2 * Wh - 1) * (2 * Ww - 1) + 3
    coords_h = np.arange(Wh)
    coords_w = np.arange(Ww)
    coords = np.stack(np.meshgrid(coords_h, coords_w, indexing="ij"))  # (2, Wh, Ww)
    coords_flatten = coords.reshape(2, -1)                             # (2, L)
    relative_coords = coords_flatten[:, :, None] - coords_flatten[:, None, :]  # (2, L, L)
    relative_coords = relative_coords.transpose(1, 2, 0).copy()        # (L, L, 2)
    relative_coords[:, :, 0] += Wh - 1
    relative_coords[:, :, 1] += Ww - 1
    relative_coords[:, :, 0] *= 2 * Ww - 1
    L = Wh * Ww
    rpi = np.zeros((L + 1, L + 1), dtype=np.int64)
    rpi[1:, 1:] = relative_coords.sum(-1)
    rpi[0, 0:] = num_relative_distance - 3
    rpi[0:, 0] = num_relative_distance - 2
    rpi[0, 0] = num_relative_distance - 1
    return rpi, num_relative_distance


def _rpb_kernel(idx_ref, table_t_ref, out_ref):
    # idx_ref     : (1, TILE_NN)     int32   current tile of flattened indices
    # table_t_ref : (H_pad, D_pad)   float32 bias table (pre-transposed, resident)
    # out_ref     : (H_pad, TILE_NN) float32 current output tile
    idx = idx_ref[...]                                    # (1, T)
    d_pad = table_t_ref.shape[1]
    tile = idx.shape[1]
    # one-hot for this tile only: onehot[d, k] = (d == idx[k])
    iota_d = jax.lax.broadcasted_iota(jnp.int32, (d_pad, tile), 0)
    onehot = (iota_d == idx).astype(jnp.float32)          # (D_pad, T), exact 0/1
    # gather-as-matmul on the MXU: (H_pad, D_pad) @ (D_pad, T) -> (H_pad, T)
    out_ref[...] = jnp.dot(
        table_t_ref[...], onehot, preferred_element_type=jnp.float32
    ).astype(out_ref.dtype)


def relative_position_bias(table, rel_pos_index, window_size, num_heads,
                           *, tile_nn=2048, vmem_budget_bytes=20 * 1024 * 1024):
    """table: (num_relative_distance, num_heads) f32; returns (num_heads, N, N)."""
    Wh, Ww = window_size
    N = Wh * Ww + 1
    NN = N * N
    D = int(table.shape[0])
    H = int(num_heads)

    # --- host-side padding to lane/sublane/MXU-friendly sizes (pure glue) ---
    LANE, SUBLANE = 128, 8
    D_pad = _round_up(D, LANE)                # aligned matmul K dim
    H_pad = _round_up(H, SUBLANE)             # unmasked sublane stores

    # Largest lane-multiple tile such that ~3 live (D_pad, tile) f32
    # intermediates (iota / compare mask / one-hot) stay inside the VMEM
    # budget, leaving headroom for the double-buffered idx/out tiles.
    tile_budget = _round_down_clamped(vmem_budget_bytes // (3 * 4 * D_pad), LANE)
    tile = max(LANE, min(_round_up(tile_nn, LANE),
                         tile_budget,
                         _round_up(NN, LANE)))
    NN_pad = _round_up(NN, tile)              # lane-dense tiles, no ragged tail
    grid_n = NN_pad // tile

    idx = jnp.asarray(np.asarray(rel_pos_index).reshape(-1), dtype=jnp.int32)
    idx = jnp.pad(idx, (0, NN_pad - NN))      # sentinel 0 for padded lanes
    idx = idx.reshape(1, NN_pad)

    table_t = jnp.asarray(table, jnp.float32).T                    # (H, D)
    table_t = jnp.pad(table_t, ((0, H_pad - H), (0, D_pad - D)))   # zero rows/cols

    cost = pl.CostEstimate(
        flops=2 * H_pad * D_pad * NN_pad,
        transcendentals=0,
        bytes_accessed=(NN_pad * 4                     # idx
                        + grid_n * H_pad * D_pad * 4   # table re-read per tile
                        + H_pad * NN_pad * 4),         # output
    )

    out_flat = pl.pallas_call(
        _rpb_kernel,
        out_shape=jax.ShapeDtypeStruct((H_pad, NN_pad), jnp.float32),
        grid=(grid_n,),
        in_specs=[
            pl.BlockSpec((1, tile), lambda i: (0, i)),        # idx tile walks NN
            pl.BlockSpec((H_pad, D_pad), lambda i: (0, 0)),   # table resident
        ],
        out_specs=pl.BlockSpec((H_pad, tile), lambda i: (0, i)),
        compiler_params=pltpu.CompilerParams(
            dimension_semantics=("parallel",),       # v7x: shard tiles over 2 TCs
            vmem_limit_bytes=32 * 1024 * 1024,
        ),
        cost_estimate=cost,
    )(idx, table_t)

    # free glue: drop padding, reshape (H, NN) -> (H, N, N)  (== permute(2,0,1))
    out = out_flat[:H, :NN].reshape(H, N, N)
    return out.astype(table.dtype)


if __name__ == "__main__":
    key = jax.random.PRNGKey(0)

    # Small config (single tile) + a slightly larger one that exercises the
    # multi-tile grid, D padding (172 -> 256) and head padding (12 -> 16).
    configs = [((4, 4), 8), ((7, 7), 12)]

    for window_size, num_heads in configs:
        rpi, num_relative_distance = _make_relative_position_index(window_size)

        key, sub = jax.random.split(key)
        table = jax.random.normal(
            sub, (num_relative_distance, num_heads), dtype=jnp.float32
        )

        out = relative_position_bias(table, rpi, window_size, num_heads)
        out = jax.block_until_ready(out)

        # Pure-numpy reference of the PyTorch forward.
        N = window_size[0] * window_size[1] + 1
        ref = np.asarray(table)[rpi.reshape(-1)].reshape(N, N, num_heads)
        ref = np.transpose(ref, (2, 0, 1))

        assert out.shape == (num_heads, N, N), out.shape
        np.testing.assert_allclose(np.asarray(out), ref, rtol=1e-6, atol=1e-6)

    print("KERNEL_OK")
</pallas_src>

<mosaic_0001>
module attributes {stable_mosaic.version = 11 : i64} {
  func.func @_rpb_kernel(%arg0: i32, %arg1: memref<1x384xi32, #tpu.memory_space<vmem>>, %arg2: memref<8x128xf32, #tpu.memory_space<vmem>>, %arg3: memref<8x384xf32, #tpu.memory_space<vmem>>) attributes {dimension_semantics = [#tpu.dimension_semantics<parallel>], iteration_bounds = array<i64: 1>, scalar_prefetch = 0 : i64, scratch_operands = 0 : i64, tpu.core_type = #tpu.core_type<tc>, window_params = [{transform_indices = @transform_0, window_bounds = array<i64: 1, 384>}, {pipeline_mode = #tpu.pipeline_mode<synchronous>, transform_indices = @transform_1, window_bounds = array<i64: 8, 128>}, {transform_indices = @transform_2, window_bounds = array<i64: 8, 384>}]} {
    %c0 = arith.constant 0 : index
    %c0_0 = arith.constant 0 : index
    %0 = vector.load %arg1[%c0, %c0_0] : memref<1x384xi32, #tpu.memory_space<vmem>>, vector<1x384xi32>
    %1 = tpu.iota {dimensions = array<i32: 0>} : vector<128x384xi32>
    %2 = vector.broadcast %0 : vector<1x384xi32> to vector<128x384xi32>
    %3 = arith.cmpi eq, %1, %2 : vector<128x384xi32>
    %4 = arith.extui %3 : vector<128x384xi1> to vector<128x384xi32>
    %5 = arith.sitofp %4 : vector<128x384xi32> to vector<128x384xf32>
    %c0_1 = arith.constant 0 : index
    %c0_2 = arith.constant 0 : index
    %6 = vector.load %arg2[%c0_1, %c0_2] : memref<8x128xf32, #tpu.memory_space<vmem>>, vector<8x128xf32>
    %cst = arith.constant dense<0.000000e+00> : vector<8x384xf32>
    %7 = tpu.matmul %6, %5, %cst {dimension_numbers = #tpu.dot_dimension_numbers<[1], [0], [0], [1], [0, 0, 1, 1], [], []>} : vector<8x128xf32>, vector<128x384xf32>, vector<8x384xf32> -> vector<8x384xf32>
    %c0_3 = arith.constant 0 : index
    %c0_4 = arith.constant 0 : index
    %8 = vector.load %arg3[%c0_3, %c0_4] : memref<8x384xf32, #tpu.memory_space<vmem>>, vector<8x384xf32>
    tpu.vector_store %arg3[%c0_3, %c0_4], %7 {strides = array<i32>} : memref<8x384xf32, #tpu.memory_space<vmem>>, vector<8x384xf32>,
    return
  }
  func.func @transform_0(%arg0: i32) -> (i32, i32) {
    %c0_i32 = arith.constant 0 : i32
    %c0_i32_0 = arith.constant 0 : i32
    return %c0_i32, %arg0 : i32, i32
  }
  func.func @transform_1(%arg0: i32) -> (i32, i32) {
    %c0_i32 = arith.constant 0 : i32
    %c0_i32_0 = arith.constant 0 : i32
    %c0_i32_1 = arith.constant 0 : i32
    return %c0_i32, %c0_i32_0 : i32, i32
  }
  func.func @transform_2(%arg0: i32) -> (i32, i32) {
    %c0_i32 = arith.constant 0 : i32
    %c0_i32_0 = arith.constant 0 : i32
    return %c0_i32, %arg0 : i32, i32
  }
}

</mosaic_0001>

<bundles_post_ra>
// kernel: tpu_custom_call.1
= control target key start
LH: loop header
LB: loop body
LE: loop exit
PB: predicated region body
PF: predicated region fallthrough
CT: control target
= control target key end

     0   :  { %7 = vsyncpa [#allocation3], 0  ;;  %s615_s0 = inlined_call_operand.hbm [shape: s32[1,384], index: 0, kind: input, shape index: {}]   ;;  %s616_s1 = inlined_call_operand.hbm [shape: f32[8,128], index: 1, kind: input, shape index: {}]   ;;  %s617_s2 = inlined_call_operand.hbm [shape: f32[8,384], index: 2, kind: output, shape index: {}]  }
   0x1   :  { %8 = vsyncpa [#allocation6], 0 }
   0x2   :  { %9 = vsyncpa [#allocation4], 0  ;;  %s15_s11 = sshll.u32 %s615_s0, 4  ;;  %s465_s12 = smov [#allocation2]   ;;  %s16_s11 = int_to_ptr.hbm [resolvable:$true] %s15_s11 }
   0x3   :  { %s17_s13 = sshll.u32 %s465_s12, 4  ;;  %s26_s16 = sshll.u32 %s616_s1, 4  ;;  %s18_s13 = int_to_ptr.vmem [resolvable:$true] %s17_s13  ;;  %s27_s16 = int_to_ptr.hbm [resolvable:$true] %s26_s16 }
   0x4   :  { %20 = dma.hbm_to_vmem [thread:$0]  %s16_s11, 48, %s18_s13, [#allocation3]  }
   0x5   :  { %s466_s17 = smov [#allocation5]  }
   0x6   :  { %s28_s18 = sshll.u32 %s466_s17, 4  ;;  %s29_s18 = int_to_ptr.vmem [resolvable:$true] %s28_s18 }
   0x7   :  { %31 = dma.hbm_to_vmem [thread:$0]  %s27_s16, 128, %s29_s18, [#allocation6]  }
   0x8   :  { %459 = dma.done.wait [#allocation3], 48  }
   0x9   :  { %460 = vsyncadd [#allocation3], 4294967248 }
   0xa   :  { %461 = dma.done.wait [#allocation6], 128  }
   0xb   :  { %462 = vsyncadd [#allocation6], 4294967168  ;;  %v41_v0 = vlaneseq  ;;  %v40_v4 = vld [vmem:[#allocation2] sm:$0x7]  ;;  %v467_v10 = vmov 1.0   ;;  %v205_v22 = vld [vmem:[#allocation5] sm:$0xff] }
   0xc   :  { %v494_v5 = vperm.slane %v40_v4, 0  ;;  %v496_v6 = vperm.slane %v40_v4, 1  ;;  %v498_v7 = vperm.slane %v40_v4, 2  ;;  %s468_s0 = smov [#allocation7]   ;;  %s276_s21 = sshll.u32 %s617_s2, 4  ;;  %s277_s21 = int_to_ptr.hbm [resolvable:$true] %s276_s21 }
   0xd   :  { %v490_v1 = vshrl.u32 %v41_v0, 7  ;;  %s274_s1 = sshll.u32 %s468_s0, 4  ;;  %s275_s1 = int_to_ptr.vmem [resolvable:$true] %s274_s1 }
   0xf   :  { %v57_v2 = vadd.s32 120, %v490_v1  ;;  %v56_v3 = vadd.s32 112, %v490_v1  ;;  %v55_v8 = vadd.s32 104, %v490_v1  ;;  %v54_v9 = vadd.s32 96, %v490_v1 }
  0x10   :  { %v53_v11 = vadd.s32 88, %v490_v1  ;;  %v52_v12 = vadd.s32 80, %v490_v1  ;;  %v51_v13 = vadd.s32 72, %v490_v1  ;;  %v50_v14 = vadd.s32 64, %v490_v1 }
  0x11   :  { %vm108_vm0 = vcmp.eq.s32.totalorder %v57_v2, %v498_v7  ;;  %vm105_vm1 = vcmp.eq.s32.totalorder %v56_v3, %v498_v7  ;;  %vm106_vm2 = vcmp.eq.s32.totalorder %v57_v2, %v494_v5  ;;  %vm107_vm3 = vcmp.eq.s32.totalorder %v57_v2, %v496_v6 }
  0x12   :  { %367 = vmatpush.msk.msra.mxu2 %vm108_vm0, %v467_v10  ;;  %335 = vmatpush.msk.msra.mxu0 %vm106_vm2, %v467_v10  ;;  %vm103_vm4 = vcmp.eq.s32.totalorder %v56_v3, %v494_v5  ;;  %vm102_vm5 = vcmp.eq.s32.totalorder %v55_v8, %v498_v7  ;;  %vm104_vm6 = vcmp.eq.s32.totalorder %v56_v3, %v496_v6  ;;  %v49_v15 = vadd.s32 56, %v490_v1 }
  0x13   :  { %351 = vmatpush.msk.msra.mxu1 %vm107_vm3, %v467_v10  ;;  %vm100_vm7 = vcmp.eq.s32.totalorder %v55_v8, %v494_v5  ;;  %vm101_vm8 = vcmp.eq.s32.totalorder %v55_v8, %v496_v6  ;;  %vm99_vm9 = vcmp.eq.s32.totalorder %v54_v9, %v498_v7  ;;  %vm97_vm10 = vcmp.eq.s32.totalorder %v54_v9, %v494_v5 }
  0x14   :  { %368 = vmatpush.msk.msra.mxu2 %vm105_vm1, %v467_v10  ;;  %336 = vmatpush.msk.msra.mxu0 %vm103_vm4, %v467_v10  ;;  %vm98_vm11 = vcmp.eq.s32.totalorder %v54_v9, %v496_v6  ;;  %vm96_vm12 = vcmp.eq.s32.totalorder %v53_v11, %v498_v7  ;;  %vm94_vm13 = vcmp.eq.s32.totalorder %v53_v11, %v494_v5  ;;  %v48_v16 = vadd.s32 48, %v490_v1 }
  0x15   :  { %352 = vmatpush.msk.msra.mxu1 %vm104_vm6, %v467_v10  ;;  %vm95_vm14 = vcmp.eq.s32.totalorder %v53_v11, %v496_v6  ;;  %vm93_vm15 = vcmp.eq.s32.totalorder %v52_v12, %v498_v7  ;;  %vm91_vm0 = vcmp.eq.s32.totalorder %v52_v12, %v494_v5  ;;  %vm92_vm1 = vcmp.eq.s32.totalorder %v52_v12, %v496_v6 }
  0x16   :  { %369 = vmatpush.msk.msra.mxu2 %vm102_vm5, %v467_v10  ;;  %337 = vmatpush.msk.msra.mxu0 %vm100_vm7, %v467_v10  ;;  %vm90_vm2 = vcmp.eq.s32.totalorder %v51_v13, %v498_v7  ;;  %vm88_vm3 = vcmp.eq.s32.totalorder %v51_v13, %v494_v5  ;;  %vm89_vm4 = vcmp.eq.s32.totalorder %v51_v13, %v496_v6  ;;  %v47_v17 = vadd.s32 40, %v490_v1 }
  0x17   :  { %353 = vmatpush.msk.msra.mxu1 %vm101_vm8, %v467_v10  ;;  %vm87_vm5 = vcmp.eq.s32.totalorder %v50_v14, %v498_v7  ;;  %vm85_vm6 = vcmp.eq.s32.totalorder %v50_v14, %v494_v5  ;;  %vm86_vm7 = vcmp.eq.s32.totalorder %v50_v14, %v496_v6  ;;  %vm84_vm8 = vcmp.eq.s32.totalorder %v49_v15, %v498_v7 }
  0x18   :  { %370 = vmatpush.msk.msra.mxu2 %vm99_vm9, %v467_v10  ;;  %338 = vmatpush.msk.msra.mxu0 %vm97_vm10, %v467_v10  ;;  %vm82_vm9 = vcmp.eq.s32.totalorder %v49_v15, %v494_v5  ;;  %vm83_vm10 = vcmp.eq.s32.totalorder %v49_v15, %v496_v6  ;;  %v46_v18 = vadd.s32 32, %v490_v1  ;;  %v45_v19 = vadd.s32 24, %v490_v1 }
  0x19   :  { %354 = vmatpush.msk.msra.mxu1 %vm98_vm11, %v467_v10  ;;  %vm81_vm11 = vcmp.eq.s32.totalorder %v48_v16, %v498_v7  ;;  %v44_v20 = vadd.s32 16, %v490_v1  ;;  %v43_v21 = vadd.s32 8, %v490_v1 }
  0x1a   :  { %371 = vmatpush.msk.msra.mxu2 %vm96_vm12, %v467_v10  ;;  %339 = vmatpush.msk.msra.mxu0 %vm94_vm13, %v467_v10  ;;  %vm79_vm12 = vcmp.eq.s32.totalorder %v48_v16, %v494_v5  ;;  %vm80_vm13 = vcmp.eq.s32.totalorder %v48_v16, %v496_v6 }
  0x1b   :  { %355 = vmatpush.msk.msra.mxu1 %vm95_vm14, %v467_v10  ;;  %vm78_vm14 = vcmp.eq.s32.totalorder %v47_v17, %v498_v7 }
  0x1c   :  { %372 = vmatpush.msk.msra.mxu2 %vm93_vm15, %v467_v10  ;;  %340 = vmatpush.msk.msra.mxu0 %vm91_vm0, %v467_v10  ;;  %vm76_vm15 = vcmp.eq.s32.totalorder %v47_v17, %v494_v5  ;;  %vm77_vm0 = vcmp.eq.s32.totalorder %v47_v17, %v496_v6 }
  0x1d   :  { %356 = vmatpush.msk.msra.mxu1 %vm92_vm1, %v467_v10  ;;  %vm75_vm1 = vcmp.eq.s32.totalorder %v46_v18, %v498_v7 }
  0x1e   :  { %373 = vmatpush.msk.msra.mxu2 %vm90_vm2, %v467_v10  ;;  %341 = vmatpush.msk.msra.mxu0 %vm88_vm3, %v467_v10  ;;  %vm73_vm2 = vcmp.eq.s32.totalorder %v46_v18, %v494_v5  ;;  %vm74_vm3 = vcmp.eq.s32.totalorder %v46_v18, %v496_v6 }
  0x1f   :  { %357 = vmatpush.msk.msra.mxu1 %vm89_vm4, %v467_v10  ;;  %vm72_vm4 = vcmp.eq.s32.totalorder %v45_v19, %v498_v7 }
  0x20   :  { %374 = vmatpush.msk.msra.mxu2 %vm87_vm5, %v467_v10  ;;  %342 = vmatpush.msk.msra.mxu0 %vm85_vm6, %v467_v10  ;;  %vm70_vm5 = vcmp.eq.s32.totalorder %v45_v19, %v494_v5  ;;  %vm71_vm6 = vcmp.eq.s32.totalorder %v45_v19, %v496_v6 }
  0x21   :  { %358 = vmatpush.msk.msra.mxu1 %vm86_vm7, %v467_v10  ;;  %vm69_vm7 = vcmp.eq.s32.totalorder %v44_v20, %v498_v7 }
  0x22   :  { %375 = vmatpush.msk.msra.mxu2 %vm84_vm8, %v467_v10  ;;  %343 = vmatpush.msk.msra.mxu0 %vm82_vm9, %v467_v10  ;;  %vm67_vm8 = vcmp.eq.s32.totalorder %v44_v20, %v494_v5  ;;  %vm68_vm9 = vcmp.eq.s32.totalorder %v44_v20, %v496_v6 }
  0x23   :  { %359 = vmatpush.msk.msra.mxu1 %vm83_vm10, %v467_v10  ;;  %vm66_vm10 = vcmp.eq.s32.totalorder %v43_v21, %v498_v7 }
  0x24   :  { %376 = vmatpush.msk.msra.mxu2 %vm81_vm11, %v467_v10  ;;  %344 = vmatpush.msk.msra.mxu0 %vm79_vm12, %v467_v10  ;;  %vm64_vm11 = vcmp.eq.s32.totalorder %v43_v21, %v494_v5  ;;  %vm65_vm12 = vcmp.eq.s32.totalorder %v43_v21, %v496_v6 }
  0x25   :  { %360 = vmatpush.msk.msra.mxu1 %vm80_vm13, %v467_v10  ;;  %vm63_vm13 = vcmp.eq.s32.totalorder %v490_v1, %v498_v7 }
  0x26   :  { %377 = vmatpush.msk.msra.mxu2 %vm78_vm14, %v467_v10  ;;  %345 = vmatpush.msk.msra.mxu0 %vm76_vm15, %v467_v10  ;;  %vm61_vm14 = vcmp.eq.s32.totalorder %v490_v1, %v494_v5  ;;  %vm62_vm15 = vcmp.eq.s32.totalorder %v490_v1, %v496_v6 }
  0x27   :  { %361 = vmatpush.msk.msra.mxu1 %vm77_vm0, %v467_v10 }
  0x28   :  { %378 = vmatpush.msk.msra.mxu2 %vm75_vm1, %v467_v10  ;;  %346 = vmatpush.msk.msra.mxu0 %vm73_vm2, %v467_v10 }
  0x29   :  { %362 = vmatpush.msk.msra.mxu1 %vm74_vm3, %v467_v10 }
  0x2a   :  { %379 = vmatpush.msk.msra.mxu2 %vm72_vm4, %v467_v10  ;;  %347 = vmatpush.msk.msra.mxu0 %vm70_vm5, %v467_v10 }
  0x2b   :  { %363 = vmatpush.msk.msra.mxu1 %vm71_vm6, %v467_v10 }
  0x2c   :  { %380 = vmatpush.msk.msra.mxu2 %vm69_vm7, %v467_v10  ;;  %348 = vmatpush.msk.msra.mxu0 %vm67_vm8, %v467_v10 }
  0x2d   :  { %364 = vmatpush.msk.msra.mxu1 %vm68_vm9, %v467_v10 }
  0x2e   :  { %381 = vmatpush.msk.msra.mxu2 %vm66_vm10, %v467_v10  ;;  %349 = vmatpush.msk.msra.mxu0 %vm64_vm11, %v467_v10 }
  0x2f   :  { %365 = vmatpush.msk.msra.mxu1 %vm65_vm12, %v467_v10 }
  0x30   :  { %382 = vmatpush.msk.msra.mxu2 %vm63_vm13, %v467_v10  ;;  %350 = vmatpush.msk.msra.mxu0 %vm61_vm14, %v467_v10 }
  0x31   :  { %262 = vmatmul.f32.vlgmr.msra.gmra.mxu2 %v205_v22  ;;  %366 = vmatpush.msk.msra.mxu1 %vm62_vm15, %v467_v10 }
  0x32   :  { %222 = vmatmul.f32.vlgmr.msra.gmra.mxu0 %v205_v22  ;;  %242 = vmatmul.f32.vlgmr.msra.gmra.mxu1 %v205_v22 }
  0xaf   :  { %v223_v23 = vpop.f32.mrf.mxu0  ;;  %v243_v24 = vpop.f32.mrf.mxu1 }
  0xb0   :  { %266 = vst [vmem:[#allocation7] sm:$0xff] %v223_v23 }
  0xb1   :  { %267 = vst [vmem:[#allocation7 + $0x8] sm:$0xff] %v243_v24 }
  0xb4   :  { %v263_v25 = vpop.f32.mrf.mxu2 }
  0xb5   :  { %268 = vst [vmem:[#allocation7 + $0x10] sm:$0xff] %v263_v25 }
  0xb6   :  { %279 = dma.vmem_to_hbm [thread:$0]  %s275_s1, 384, %s277_s21, [#allocation4]  }
  0xb7   :  { %463 = dma.done.wait [#allocation4], 384  }
  0xb8   :  { %464 = vsyncadd [#allocation4], 4294966912 }
  0xb9   :  { %284 = vsyncpa [#allocation3], 1 }
  0xba   :  { %285 = vsyncpa [#allocation6], 1 }
  0xbb   :  { %286 = vsyncpa [#allocation4], 1 }

</bundles_post_ra>
